<compile_context>
chip_gen: v6e
topology: v6e:2x2x1
jax: 0.10.0
libtpu: 0.0.40
codegen_flags: <defaults>
</compile_context>

<pallas_src>
import jax
import jax.numpy as jnp
from jax.experimental import pallas as pl
from jax.experimental.pallas import tpu as pltpu

_LANE = 128
_MAX_COLS = 16 * 1024                    # lane-dense width cap (128 * 128 lanes)
_TARGET_BLOCK_BYTES = 8 * 1024 * 1024    # ~8 MiB per block (perf-review guidance)
_VMEM_LIMIT_BYTES = 48 * 1024 * 1024     # leaves headroom on v7x's 64 MiB VMEM


def _copy_kernel(x_ref, o_ref):
    # Identity copy of the current (tile_rows, cols) block — pure DMA/vst work.
    o_ref[...] = x_ref[...]


def _min_sublanes(dtype) -> int:
    """Packed-dtype sublane minimum for a legal/efficient tile."""
    itemsize = jnp.dtype(dtype).itemsize
    if itemsize >= 4:
        return 8
    if itemsize == 2:
        return 16
    return 32


def _pick_cols(padded_total: int) -> int:
    """Largest multiple of 128 that divides padded_total, capped at _MAX_COLS."""
    q = padded_total // _LANE
    best = 1
    for d in range(1, min(_MAX_COLS // _LANE, q) + 1):
        if q % d == 0:
            best = d
    return best * _LANE


@jax.jit
def flatten_pallas(x: jax.Array) -> jax.Array:
    """torch.flatten(x) equivalent: 1-D row-major result, materialized via a
    lane-dense, multi-MiB-block Pallas identity copy."""
    total = 1
    for d in x.shape:
        total *= d
    itemsize = jnp.dtype(x.dtype).itemsize
    min_rows = _min_sublanes(x.dtype)

    x1d = jnp.reshape(x, (total,))                 # metadata-only glue

    # Pad up to a lane/sublane-aligned element count so every shape takes the
    # tiled fast path; the tail is sliced off after the kernel.
    align = min_rows * _LANE
    padded_total = ((total + align - 1) // align) * align
    if padded_total != total:
        x1d = jnp.pad(x1d, (0, padded_total - total))

    cols = _pick_cols(padded_total)
    rows = padded_total // cols
    x2d = jnp.reshape(x1d, (rows, cols))           # metadata-only glue

    # Row tile sized for ~8 MiB blocks, aligned to the sublane minimum.
    bytes_per_row = cols * itemsize
    target_rows = max(min_rows, _TARGET_BLOCK_BYTES // bytes_per_row)
    if rows <= target_rows:
        tile_rows = rows                           # single full-height block (== dim, legal)
    else:
        tile_rows = max(min_rows, (target_rows // min_rows) * min_rows)

    grid = (pl.cdiv(rows, tile_rows),)             # Pallas masks the ragged last block

    y2d = pl.pallas_call(
        _copy_kernel,
        out_shape=jax.ShapeDtypeStruct((rows, cols), x.dtype),
        grid_spec=pltpu.PrefetchScalarGridSpec(
            num_scalar_prefetch=0,
            grid=grid,
            in_specs=[pl.BlockSpec((tile_rows, cols), lambda i: (i, 0))],
            out_specs=pl.BlockSpec((tile_rows, cols), lambda i: (i, 0)),
        ),
        compiler_params=pltpu.CompilerParams(
            dimension_semantics=("parallel",),     # lets v7x shard rows across both TCs
            vmem_limit_bytes=_VMEM_LIMIT_BYTES,
        ),
        cost_estimate=pl.CostEstimate(
            flops=0,
            transcendentals=0,
            bytes_accessed=2 * padded_total * itemsize,
        ),
    )(x2d)

    y1d = jnp.reshape(y2d, (padded_total,))        # metadata-only glue
    if padded_total != total:
        y1d = y1d[:total]                          # drop the alignment tail
    return y1d


if __name__ == "__main__":
    key = jax.random.PRNGKey(0)
    # Small NCHW input consistent with the module's forward.
    x = jax.random.normal(key, (2, 4, 16, 16), dtype=jnp.float32)

    out = jax.block_until_ready(flatten_pallas(x))

    # Reference check against plain JAX row-major flatten (== torch.flatten).
    ref = jnp.reshape(x, (-1,))
    assert out.shape == (2 * 4 * 16 * 16,), out.shape
    assert out.dtype == x.dtype
    assert bool(jnp.all(out == ref))

    print("KERNEL_OK")
</pallas_src>

<mosaic_0001>
module attributes {stable_mosaic.version = 11 : i64} {
  func.func @_copy_kernel(%arg0: i32, %arg1: memref<1x2048xf32, #tpu.memory_space<vmem>>, %arg2: memref<1x2048xf32, #tpu.memory_space<vmem>>) attributes {dimension_semantics = [#tpu.dimension_semantics<parallel>], iteration_bounds = array<i64: 1>, scalar_prefetch = 0 : i64, scratch_operands = 0 : i64, tpu.core_type = #tpu.core_type<tc>, window_params = [{transform_indices = @transform_0, window_bounds = array<i64: 1, 2048>}, {transform_indices = @transform_1, window_bounds = array<i64: 1, 2048>}]} {
    %c0 = arith.constant 0 : index
    %c0_0 = arith.constant 0 : index
    %0 = vector.load %arg1[%c0, %c0_0] : memref<1x2048xf32, #tpu.memory_space<vmem>>, vector<1x2048xf32>
    %c0_1 = arith.constant 0 : index
    %c0_2 = arith.constant 0 : index
    %1 = vector.load %arg2[%c0_1, %c0_2] : memref<1x2048xf32, #tpu.memory_space<vmem>>, vector<1x2048xf32>
    tpu.vector_store %arg2[%c0_1, %c0_2], %0 {strides = array<i32>} : memref<1x2048xf32, #tpu.memory_space<vmem>>, vector<1x2048xf32>,
    return
  }
  func.func @transform_0(%arg0: i32) -> (i32, i32) {
    %c0_i32 = arith.constant 0 : i32
    %c0_i32_0 = arith.constant 0 : i32
    return %arg0, %c0_i32 : i32, i32
  }
  func.func @transform_1(%arg0: i32) -> (i32, i32) {
    %c0_i32 = arith.constant 0 : i32
    %c0_i32_0 = arith.constant 0 : i32
    return %arg0, %c0_i32 : i32, i32
  }
}

</mosaic_0001>

<bundles_post_ra>
// kernel: flatten_pallas.1
= control target key start
LH: loop header
LB: loop body
LE: loop exit
PB: predicated region body
PF: predicated region fallthrough
CT: control target
= control target key end

     0   :  { %s70_s0 = inlined_call_operand.vmem [shape: f32[1,2048], index: 0, kind: input, shape index: {}]   ;;  %s71_s1 = inlined_call_operand.hbm [shape: f32[1,2048], index: 1, kind: output, shape index: {}]  }
   0x1   :  { %v9_v0 = vld [vmem:[%s70_s0] sm:$0xff]  ;;  %v10_v1 = vld [vmem:[%s70_s0 + $0x8] sm:$0xff] }
   0x2   :  { %6 = vsyncpa [#allocation3], 0  ;;  %11 = vst [vmem:[#allocation2] sm:$0xff] %v9_v0  ;;  %s50_s10 = smov [#allocation2]  }
   0x3   :  { %12 = vst [vmem:[#allocation2 + $0x8] sm:$0xff] %v10_v1  ;;  %s19_s11 = sshll.u32 %s50_s10, 4  ;;  %s20_s11 = int_to_ptr.vmem [resolvable:$true] %s19_s11 }
   0x4   :  { %s28_s12 = scalar_lea.vmem %s20_s11, 256  ;;  %p33_p1 = scmp.lt.s32.totalorder %s20_s11, %s20_s11 }
   0x5   :  { %p29_p0 = scmp.ne.s32.totalorder %s20_s11, %s28_s12  ;;  %p34_p2 = scmp.lt.s32.totalorder %s28_s12, %s28_s12 }
   0x7   :  { %p35_p3 = por %p34_p2, %p33_p1 }
   0x9   :  { %p36_p4 = pnand %p35_p3, %p29_p0 }
   0xb   :  { %39 = shalt.err (!%p36_p4)
}
   0xc   :  { %22 = dma.vmem_to_hbm [thread:$0]  %s20_s11, 256, %s71_s1, [#allocation3]  }
   0xd   :  { %48 = dma.done.wait [#allocation3], 256  }
   0xe   :  { %49 = vsyncadd [#allocation3], 4294967040 }
   0xf   :  { %26 = vsyncpa [#allocation3], 1 }

</bundles_post_ra>
